<compile_context>
chip_gen: v7x
topology: tpu7x:2x2x1
jax: 0.10.0
libtpu: 0.0.40
codegen_flags: <defaults>
</compile_context>

<pallas_src>
import functools

import jax
import jax.numpy as jnp
from jax import lax
from jax.experimental import pallas as pl
from jax.experimental.pallas import tpu as pltpu


def _round_up(x: int, m: int) -> int:
    return (x + m - 1) // m * m


def _classifier_kernel(x_ref, w_ref, b_ref, o_ref, *, norm_feat: bool):
    """Per-M-tile: (optional L2-normalize) -> matmul (MXU) -> bias add."""
    x = x_ref[...]                                      # (TM, C), input dtype
    if norm_feat:
        # F.normalize(x, p=2, dim=-1): x / max(||x||_2, 1e-12)
        #   == x * rsqrt(max(sum(x^2), 1e-24))   (sqrt is monotone)
        xf = x.astype(jnp.float32)
        ss = jnp.sum(xf * xf, axis=-1, keepdims=True)   # f32 accumulate
        inv = lax.rsqrt(jnp.maximum(ss, jnp.float32(1e-24)))   # EUP
        x = x * inv.astype(x.dtype)                     # keep MXU operand dtype
    y = jnp.dot(x, w_ref[...], preferred_element_type=jnp.float32)
    y = y + b_ref[...]                                  # bias pre-cast to f32
    o_ref[...] = y.astype(o_ref.dtype)


def _choose_block_m(M, C, n_out, itemsize, *, max_block_m, vmem_data_budget):
    """Largest multiple-of-8 row tile fitting the VMEM data budget."""
    resident = C * n_out * itemsize + n_out * 4          # weights + f32 bias
    per_row = 2 * (C + n_out) * itemsize                 # 2x-buffered x + out
    tm = (vmem_data_budget - resident) // per_row
    tm = max(8, (tm // 8) * 8)
    tm = min(tm, max_block_m, _round_up(M, 8))
    return int(tm)


def incremental_classifier_forward(x, weights, biases, *, norm_feat=False,
                                   max_block_m=2048,
                                   vmem_data_budget=8 * 1024 * 1024):
    """x: [B, D1, D2, C]; weights[i]: [c, C]; biases[i]: [c].

    Returns the same tensor as IncrementalClassifier.forward: heads applied
    in order cls[1:], cls[0], results concatenated along dim=2 (this requires
    all heads to have the same number of classes, as in the PyTorch module).
    """
    B, D1, D2, C = x.shape
    H = len(weights)
    c = weights[0].shape[0]
    assert all(w.shape == (c, C) for w in weights)

    dtype = x.dtype
    itemsize = jnp.dtype(dtype).itemsize

    # Head application order from the PyTorch forward: cls[1:], then cls[0].
    order = list(range(1, H)) + [0]
    # Stack + cast once in the wrapper (hoisted out of the per-tile path).
    w_big = jnp.concatenate([weights[i] for i in order], axis=0).T.astype(dtype)      # [C, H*c]
    b_big = jnp.concatenate([biases[i] for i in order],
                            axis=0).astype(jnp.float32)[None, :]                      # [1, H*c]
    n_out = H * c

    x_flat = x.reshape(B * D1 * D2, C)
    M = x_flat.shape[0]

    # Tile M for DMA/compute pipelining; weights/bias stay resident.
    tm = _choose_block_m(M, C, n_out, itemsize,
                         max_block_m=max_block_m,
                         vmem_data_budget=vmem_data_budget)
    M_pad = _round_up(M, tm)
    if M_pad != M:
        x_flat = jnp.pad(x_flat, ((0, M_pad - M), (0, 0)))
    grid = (pl.cdiv(M_pad, tm),)

    kernel = functools.partial(_classifier_kernel, norm_feat=norm_feat)

    cost = pl.CostEstimate(
        flops=2 * M_pad * C * n_out,
        transcendentals=M_pad if norm_feat else 0,
        bytes_accessed=(M_pad * C * itemsize + C * n_out * itemsize
                        + n_out * 4 + M_pad * n_out * itemsize),
    )

    y_flat = pl.pallas_call(
        kernel,
        out_shape=jax.ShapeDtypeStruct((M_pad, n_out), dtype),
        grid=grid,
        in_specs=[
            pl.BlockSpec((tm, C), lambda i: (i, 0)),        # x tile (pipelined)
            pl.BlockSpec((C, n_out), lambda i: (0, 0)),     # weights (resident)
            pl.BlockSpec((1, n_out), lambda i: (0, 0)),     # bias    (resident)
        ],
        out_specs=pl.BlockSpec((tm, n_out), lambda i: (i, 0)),
        compiler_params=pltpu.CompilerParams(
            dimension_semantics=("parallel",),              # megacore on v7x
            vmem_limit_bytes=32 * 1024 * 1024,
        ),
        cost_estimate=cost,
    )(x_flat, w_big, b_big)

    # y_flat[:, k*c:(k+1)*c] is head order[k]'s output.  torch.cat(dim=2)
    # stacks the per-head [B,D1,D2,c] blocks along axis 2 -> swap (D2, H).
    y = y_flat[:M].reshape(B, D1, D2, H, c)
    y = jnp.transpose(y, (0, 1, 3, 2, 4)).reshape(B, D1, H * D2, c)
    return y


def _reference_forward(x, weights, biases, *, norm_feat=False):
    """Pure-JAX reference mirroring the PyTorch module line by line."""
    xf = x.astype(jnp.float32)
    if norm_feat:
        nrm = jnp.sqrt(jnp.sum(xf * xf, axis=3, keepdims=True))
        xf = xf / jnp.maximum(nrm, 1e-12)
    outs = []
    H = len(weights)
    for i in list(range(1, H)) + [0]:
        outs.append(xf @ weights[i].astype(jnp.float32).T
                    + biases[i].astype(jnp.float32))
    return jnp.concatenate(outs, axis=2).astype(x.dtype)


if __name__ == "__main__":
    key = jax.random.PRNGKey(0)

    # Small shapes consistent with the module: channels=32, 3 heads of 4
    # classes each (equal sizes, required by torch.cat(dim=2)).
    B, D1, D2, C = 2, 8, 2, 32
    classes = [4, 4, 4]
    norm_feat = True

    kx, *kps = jax.random.split(key, 1 + 2 * len(classes))
    x = jax.random.normal(kx, (B, D1, D2, C), dtype=jnp.float32)

    weights, biases = [], []
    for i, c in enumerate(classes):
        kw, kb = kps[2 * i], kps[2 * i + 1]
        bound = 1.0 / (C ** 0.5)  # nn.Linear-style uniform init
        weights.append(jax.random.uniform(kw, (c, C), jnp.float32, -bound, bound))
        biases.append(jax.random.uniform(kb, (c,), jnp.float32, -bound, bound))

    out = incremental_classifier_forward(x, weights, biases, norm_feat=norm_feat)
    out = jax.block_until_ready(out)

    ref = _reference_forward(x, weights, biases, norm_feat=norm_feat)
    assert out.shape == (B, D1, len(classes) * D2, classes[0]), out.shape
    assert jnp.allclose(out, ref, atol=1e-5, rtol=1e-5), "mismatch vs reference"

    print("KERNEL_OK")
</pallas_src>

<mosaic_0001>
module attributes {stable_mosaic.version = 11 : i64} {
  func.func @_classifier_kernel(%arg0: i32, %arg1: memref<32x32xf32, #tpu.memory_space<vmem>>, %arg2: memref<32x12xf32, #tpu.memory_space<vmem>>, %arg3: memref<1x12xf32, #tpu.memory_space<vmem>>, %arg4: memref<32x12xf32, #tpu.memory_space<vmem>>) attributes {dimension_semantics = [#tpu.dimension_semantics<parallel>], iteration_bounds = array<i64: 1>, scalar_prefetch = 0 : i64, scratch_operands = 0 : i64, tpu.core_type = #tpu.core_type<tc>, window_params = [{transform_indices = @transform_0, window_bounds = array<i64: 32, 32>}, {pipeline_mode = #tpu.pipeline_mode<synchronous>, transform_indices = @transform_1, window_bounds = array<i64: 32, 12>}, {pipeline_mode = #tpu.pipeline_mode<synchronous>, transform_indices = @transform_2, window_bounds = array<i64: 1, 12>}, {transform_indices = @transform_3, window_bounds = array<i64: 32, 12>}]} {
    %c0 = arith.constant 0 : index
    %c0_0 = arith.constant 0 : index
    %0 = vector.load %arg1[%c0, %c0_0] : memref<32x32xf32, #tpu.memory_space<vmem>>, vector<32x32xf32>
    %1 = arith.mulf %0, %0 : vector<32x32xf32>
    %cst = arith.constant dense<0.000000e+00> : vector<32xf32>
    %2 = vector.multi_reduction <add>, %1, %cst [1] : vector<32x32xf32> to vector<32xf32>
    %3 = vector.shape_cast %2 : vector<32xf32> to vector<32x1xf32>
    %cst_1 = arith.constant 1.000000e-24 : f32
    %4 = vector.broadcast %cst_1 : f32 to vector<32x1xf32>
    %5 = arith.maximumf %3, %4 : vector<32x1xf32>
    %6 = math.rsqrt %5 : vector<32x1xf32>
    %7 = vector.broadcast %6 : vector<32x1xf32> to vector<32x32xf32>
    %8 = arith.mulf %0, %7 : vector<32x32xf32>
    %c0_2 = arith.constant 0 : index
    %c0_3 = arith.constant 0 : index
    %9 = vector.load %arg2[%c0_2, %c0_3] : memref<32x12xf32, #tpu.memory_space<vmem>>, vector<32x12xf32>
    %cst_4 = arith.constant dense<0.000000e+00> : vector<32x12xf32>
    %10 = tpu.matmul %8, %9, %cst_4 {dimension_numbers = #tpu.dot_dimension_numbers<[1], [0], [0], [1], [0, 0, 1, 1], [], []>} : vector<32x32xf32>, vector<32x12xf32>, vector<32x12xf32> -> vector<32x12xf32>
    %c0_5 = arith.constant 0 : index
    %c0_6 = arith.constant 0 : index
    %11 = vector.load %arg3[%c0_5, %c0_6] : memref<1x12xf32, #tpu.memory_space<vmem>>, vector<1x12xf32>
    %12 = vector.broadcast %11 : vector<1x12xf32> to vector<32x12xf32>
    %13 = arith.addf %10, %12 : vector<32x12xf32>
    %c0_7 = arith.constant 0 : index
    %c0_8 = arith.constant 0 : index
    %14 = vector.load %arg4[%c0_7, %c0_8] : memref<32x12xf32, #tpu.memory_space<vmem>>, vector<32x12xf32>
    tpu.vector_store %arg4[%c0_7, %c0_8], %13 {strides = array<i32>} : memref<32x12xf32, #tpu.memory_space<vmem>>, vector<32x12xf32>,
    return
  }
  func.func @transform_0(%arg0: i32) -> (i32, i32) {
    %c0_i32 = arith.constant 0 : i32
    %c0_i32_0 = arith.constant 0 : i32
    return %arg0, %c0_i32 : i32, i32
  }
  func.func @transform_1(%arg0: i32) -> (i32, i32) {
    %c0_i32 = arith.constant 0 : i32
    %c0_i32_0 = arith.constant 0 : i32
    %c0_i32_1 = arith.constant 0 : i32
    return %c0_i32, %c0_i32_0 : i32, i32
  }
  func.func @transform_2(%arg0: i32) -> (i32, i32) {
    %c0_i32 = arith.constant 0 : i32
    %c0_i32_0 = arith.constant 0 : i32
    %c0_i32_1 = arith.constant 0 : i32
    return %c0_i32, %c0_i32_0 : i32, i32
  }
  func.func @transform_3(%arg0: i32) -> (i32, i32) {
    %c0_i32 = arith.constant 0 : i32
    %c0_i32_0 = arith.constant 0 : i32
    return %arg0, %c0_i32 : i32, i32
  }
}

</mosaic_0001>

<bundles_post_ra>
// kernel: tpu_custom_call.1
= control target key start
LH: loop header
LB: loop body
LE: loop exit
PB: predicated region body
PF: predicated region fallthrough
CT: control target
= control target key end

     0   :  { %vm22_vm0 = vcmask 261120   ;;  %vm155_vm1 = vcmask 97280   ;;  %s278_s0 = inlined_call_operand.vmem [shape: f32[32,32], index: 0, kind: input, shape index: {}]   ;;  %s279_s1 = inlined_call_operand.vmem [shape: f32[32,12], index: 1, kind: input, shape index: {}]   ;;  %s280_s2 = inlined_call_operand.vmem [shape: f32[1,12], index: 2, kind: input, shape index: {}]   ;;  %s281_s3 = inlined_call_operand.vmem [shape: f32[32,12], index: 3, kind: output, shape index: {}]  }
   0x1   :  { %v14_v0 = vld [vmem:[%s278_s0] sm:$0xff]  ;;  %v15_v1 = vld [vmem:[%s278_s0 + $0x8] sm:$0xff]  ;;  %v16_v2 = vld [vmem:[%s278_s0 + $0x10] sm:$0xff] }
   0x2   :  { %v18_v3 = vmul.f32 %v14_v0, %v14_v0  ;;  %v19_v4 = vmul.f32 %v15_v1, %v15_v1  ;;  %v20_v5 = vmul.f32 %v16_v2, %v16_v2  ;;  %v17_v6 = vld [vmem:[%s278_s0 + $0x18] sm:$0xff]  ;;  %v47_v12 = vld [vmem:[%s279_s1] sm:$0xff]  ;;  %v48_v13 = vld [vmem:[%s279_s1 + $0x8] sm:$0xff] }
   0x3   :  { %v21_v7 = vmul.f32 %v17_v6, %v17_v6  ;;  %v191_v14 = vpack.c.bf16 %v48_v13, %v47_v12  ;;  %v49_v15 = vld [vmem:[%s279_s1 + $0x10] sm:$0xff]  ;;  %v50_v16 = vld [vmem:[%s279_s1 + $0x18] sm:$0xff]  ;;  %v164_v34 = vld [vmem:[%s280_s2] ss:$0 sm:$0xff] }
   0x4   :  { %v23_v8 = vsel %vm22_vm0, %v18_v3, 0.0  ;;  %v26_v9 = vsel %vm22_vm0, %v19_v4, 0.0  ;;  %v29_v10 = vsel %vm22_vm0, %v20_v5, 0.0  ;;  %v195_v17 = vpack.c.bf16 %v50_v16, %v49_v15 }
   0x5   :  { %24 = vadd.xlane.f32.xlu0 %v23_v8  ;;  %27 = vadd.xlane.f32.xlu1 %v26_v9  ;;  %v32_v11 = vsel %vm22_vm0, %v21_v7, 0.0 }
   0x6   :  { %192 = vmatprep.subr.bf16.mxu0 %v191_v14  ;;  %199 = vmatprep.subr.bf16.mxu1 %v191_v14 }
   0x7   :  { %194 = vmatpush3.bf16.msra.mxu0 %v191_v14  ;;  %201 = vmatpush3.bf16.msra.mxu1 %v191_v14 }
   0x8   :  { %196 = vmatprep.subr.bf16.mxu0 %v195_v17  ;;  %200 = vmatprep.subr.bf16.mxu1 %v195_v17 }
   0x9   :  { %30 = vadd.xlane.f32.xlu0 %v29_v10  ;;  %33 = vadd.xlane.f32.xlu1 %v32_v11 }
   0xb   :  { %198 = vmatpush3.bf16.msra.mxu0 %v195_v17  ;;  %202 = vmatpush3.bf16.msra.mxu1 %v195_v17 }
  0x92   :  { %v25_v18 = vpop.xlane.xlu0 %24  ;;  %v28_v19 = vpop.xlane.xlu1 %27 }
  0x93   :  { %v35_v20 = vmax.f32 %v25_v18, 1e-24  ;;  %v36_v21 = vmax.f32 %v28_v19, 1e-24 }
  0x95   :  { %203 = vrsqrt.f32 %v35_v20 }
  0x96   :  { %205 = vrsqrt.f32 %v36_v21  ;;  %v31_v22 = vpop.xlane.xlu0 %30  ;;  %v34_v23 = vpop.xlane.xlu1 %33 }
  0x97   :  { %v37_v24 = vmax.f32 %v31_v22, 1e-24  ;;  %v38_v25 = vmax.f32 %v34_v23, 1e-24 }
  0x99   :  { %207 = vrsqrt.f32 %v37_v24 }
  0x9a   :  { %209 = vrsqrt.f32 %v38_v25 }
  0x9f   :  { %v204_v26 = vpop.eup %203 }
  0xa0   :  { %v206_v27 = vpop.eup %205  ;;  %v43_v28 = vmul.f32 %v204_v26, %v14_v0 }
  0xa1   :  { %v44_v29 = vmul.f32 %v206_v27, %v15_v1 }
  0xa2   :  { %185 = vmatprep.mubr.msk.f32.mxu0 %vm22_vm0, %v43_v28 }
  0xa3   :  { %v208_v30 = vpop.eup %207  ;;  %186 = vmatmul.mubr.msk.f32.vlgmr.msra.gmra.mrb[0].mxu0 %vm22_vm0, %v44_v29 }
  0xa4   :  { %v210_v31 = vpop.eup %209  ;;  %v45_v32 = vmul.f32 %v208_v30, %v16_v2 }
  0xa5   :  { %v46_v33 = vmul.f32 %v210_v31, %v17_v6 }
  0xa6   :  { %188 = vmatprep.mubr.msk.f32.mxu1 %vm22_vm0, %v45_v32 }
  0xa7   :  { %189 = vmatmul.mubr.msk.f32.vlgmr.msra.gmra.mrb[0].mxu1 %vm22_vm0, %v46_v33 }
 0x176   :  { %v187_v35 = vpop.f32.mrb[0].mxu0 }
 0x177   :  { %v142_v36 = vadd.f32 %v187_v35, %v164_v34  ;;  %v136_v37 = vpop.f32.mrb[1].mxu0 }
 0x178   :  { %v137_v38 = vadd.f32 %v164_v34, %v136_v37 }
 0x179   :  { %157 = vst.msk [vmem:[%s281_s3 + $0x8] sm:$0xff] %vm155_vm1, %v142_v36 }
 0x17a   :  { %156 = vst.msk [vmem:[%s281_s3] sm:$0xff] %vm155_vm1, %v137_v38  ;;  %v190_v39 = vpop.f32.mrb[0].mxu1 }
 0x17b   :  { %v152_v40 = vadd.f32 %v190_v39, %v164_v34  ;;  %v146_v41 = vpop.f32.mrb[1].mxu1 }
 0x17c   :  { %v147_v42 = vadd.f32 %v164_v34, %v146_v41 }
 0x17d   :  { %159 = vst.msk [vmem:[%s281_s3 + $0x18] sm:$0xff] %vm155_vm1, %v152_v40 }
 0x17e   :  { %158 = vst.msk [vmem:[%s281_s3 + $0x10] sm:$0xff] %vm155_vm1, %v147_v42 }

</bundles_post_ra>
